<compile_context>
chip_gen: v7x
topology: tpu7x:2x2x1
jax: 0.10.0
libtpu: 0.0.40
codegen_flags: <defaults>
</compile_context>

<pallas_src>
import jax
import jax.numpy as jnp
import numpy as np
from jax.experimental import pallas as pl
from jax.experimental.pallas import tpu as pltpu

HEADS = 4  # head count used by the demo in __main__


def cross_attention_kernel(x_ref, y_ref, wqk_ref, bqk_ref, wp_ref, bp_ref,
                           out_ref, attn_ref, acc_ref):
    # x_ref   : (B, tn, C)   -- N-tile of x, resident across the head axis
    # y_ref   : (B, L,  C)   -- full y, resident across the whole grid
    # wqk_ref : (1, C, hd)   -- this head's qk-projection columns
    # bqk_ref : (1, 1, hd)   -- this head's qk bias slice
    # wp_ref  : (1, hd, C)   -- this head's rows of the output projection
    # bp_ref  : (1, C)       -- output projection bias (resident)
    # out_ref : (B, tn, C)   -- resident across heads (written at last head)
    # attn_ref: (B, 1, tn, L)
    # acc_ref : (B, tn, C) f32 scratch accumulator
    h = pl.program_id(1)
    B, tn, C = x_ref.shape
    L = y_ref.shape[1]
    hd = wqk_ref.shape[-1]
    scale = hd ** (-0.5)

    @pl.when(h == 0)
    def _():
        acc_ref[...] = jnp.zeros_like(acc_ref)

    w_h = wqk_ref[0]                      # (C, hd)
    b_h = bqk_ref[0]                      # (1, hd)

    # Fused q / k(=v) projection: one tall (B*(tn+L), C) @ (C, hd) MXU matmul,
    # bias added once to the fused result.
    x2 = x_ref[...].reshape(B * tn, C)
    y2 = y_ref[...].reshape(B * L, C)
    xy = jnp.concatenate([x2, y2], axis=0)                      # (B*(tn+L), C)
    proj = jnp.dot(xy, w_h, preferred_element_type=jnp.float32) + b_h

    q = proj[:B * tn].reshape(B, tn, hd) * scale                # scale folded into q
    kv = proj[B * tn:].reshape(B, L, hd)                        # k == v in the reference

    scores = jnp.einsum('bnd,bld->bnl', q, kv,
                        preferred_element_type=jnp.float32)     # (B, tn, L)

    # softmax over dim=0 (batch axis), exactly as in the PyTorch module
    m = jnp.max(scores, axis=0, keepdims=True)
    e = jnp.exp(scores - m)
    denom = jnp.sum(e, axis=0, keepdims=True)
    attn = e * pl.reciprocal(denom, approx=False)               # exact reciprocal

    attn_ref[...] = attn.reshape(B, 1, tn, L).astype(attn_ref.dtype)

    o = jnp.einsum('bnl,bld->bnd', attn, kv,
                   preferred_element_type=jnp.float32)          # (B, tn, hd)

    # Accumulate this head's contribution to the output projection
    # (out = sum_h o_h @ wp[h*hd:(h+1)*hd, :] + bp), no concatenate needed.
    acc_ref[...] += jnp.einsum('bnd,dc->bnc', o, wp_ref[0],
                               preferred_element_type=jnp.float32)

    @pl.when(h == pl.num_programs(1) - 1)
    def _():
        out_ref[...] = (acc_ref[...] + bp_ref[...]).astype(out_ref.dtype)


def _pick_tn(N):
    # Largest tile of N that is a multiple of 8 (BlockSpec sublane rule); for
    # v7x's 64 MiB VMEM prefer the smaller end of what fits.
    for tn in (256, 128, 64, 32, 16, 8):
        if N % tn == 0:
            return tn
    return N


def cross_attention(x, y, wqk, bqk, wp, bp, *, heads=HEADS, tn=None):
    B, N, C = x.shape
    L = y.shape[1]
    assert C % heads == 0
    hd = C // heads
    if tn is None:
        tn = _pick_tn(N)
    assert N % tn == 0
    nt = N // tn

    # Wrapper-side (free) re-layouts so each head's weight slice is a clean block.
    wqk_h = wqk.reshape(C, heads, hd).transpose(1, 0, 2)   # (H, C, hd)
    bqk_h = bqk.reshape(heads, 1, hd)                      # (H, 1, hd)
    wp_h = wp.reshape(heads, hd, C)                        # (H, hd, C)
    bp_r = bp.reshape(1, C)

    out, attn = pl.pallas_call(
        cross_attention_kernel,
        out_shape=(jax.ShapeDtypeStruct((B, N, C), x.dtype),
                   jax.ShapeDtypeStruct((B, heads, N, L), jnp.float32)),
        grid_spec=pltpu.PrefetchScalarGridSpec(
            num_scalar_prefetch=0,
            grid=(nt, heads),                                   # heads innermost (reduction for out)
            in_specs=[
                pl.BlockSpec((B, tn, C), lambda i, h: (0, i, 0)),    # x N-tile
                pl.BlockSpec((B, L, C), lambda i, h: (0, 0, 0)),     # y resident
                pl.BlockSpec((1, C, hd), lambda i, h: (h, 0, 0)),    # per-head qk cols
                pl.BlockSpec((1, 1, hd), lambda i, h: (h, 0, 0)),    # per-head qk bias
                pl.BlockSpec((1, hd, C), lambda i, h: (h, 0, 0)),    # per-head proj rows
                pl.BlockSpec((1, C), lambda i, h: (0, 0)),           # proj bias resident
            ],
            out_specs=(
                pl.BlockSpec((B, tn, C), lambda i, h: (0, i, 0)),        # out (acc over h)
                pl.BlockSpec((B, 1, tn, L), lambda i, h: (0, h, i, 0)),  # attn
            ),
            scratch_shapes=[pltpu.VMEM((B, tn, C), jnp.float32)],
        ),
        compiler_params=pltpu.CompilerParams(
            dimension_semantics=("parallel", "arbitrary")),
    )(x, y, wqk_h, bqk_h, wp_h, bp_r)
    return out, attn


def cross_attention_reference(x, y, wqk, bqk, wp, bp, heads=HEADS):
    # pure-JAX mirror of the PyTorch forward (eval mode)
    B, N, C = x.shape
    L = y.shape[1]
    hd = C // heads
    scale = hd ** (-0.5)
    q = (x @ wqk + bqk).reshape(B, N, heads, hd).transpose(0, 2, 1, 3)
    k = (y @ wqk + bqk).reshape(B, L, heads, hd).transpose(0, 2, 1, 3)
    v = k
    attn = jnp.einsum('bhnd,bhld->bhnl', q, k) * scale
    attn = jax.nn.softmax(attn, axis=0)                 # softmax over batch dim
    o = jnp.einsum('bhnl,bhld->bhnd', attn, v)
    o = o.transpose(0, 2, 1, 3).reshape(B, N, C)
    o = o @ wp + bp
    return o, attn


if __name__ == "__main__":
    B, N, L, C = 2, 16, 8, 32
    assert C % HEADS == 0

    key = jax.random.PRNGKey(0)
    kx, ky, k1, k2, k3, k4 = jax.random.split(key, 6)

    x = jax.random.normal(kx, (B, N, C), dtype=jnp.float32)
    y = jax.random.normal(ky, (B, L, C), dtype=jnp.float32)

    # deterministic parameter init (synthetic; shapes from nn.Linear(dim, dim))
    wqk = jax.random.normal(k1, (C, C), dtype=jnp.float32) * 0.05
    bqk = jax.random.normal(k2, (C,), dtype=jnp.float32) * 0.05
    wp = jax.random.normal(k3, (C, C), dtype=jnp.float32) * 0.05
    bp = jax.random.normal(k4, (C,), dtype=jnp.float32) * 0.05

    # tn=8 so the toy problem actually exercises the (N-tiles, heads) grid.
    out, attn = cross_attention(x, y, wqk, bqk, wp, bp, heads=HEADS, tn=8)
    out = jax.block_until_ready(out)
    attn = jax.block_until_ready(attn)

    out_ref, attn_ref = cross_attention_reference(x, y, wqk, bqk, wp, bp, HEADS)

    np.testing.assert_allclose(np.asarray(out), np.asarray(out_ref),
                               rtol=1e-4, atol=1e-4)
    np.testing.assert_allclose(np.asarray(attn), np.asarray(attn_ref),
                               rtol=1e-4, atol=1e-4)
    print("KERNEL_OK")
</pallas_src>

<mosaic_0001>
module attributes {stable_mosaic.version = 11 : i64} {
  func.func @cross_attention_kernel(%arg0: i32, %arg1: i32, %arg2: memref<2x8x32xf32, #tpu.memory_space<vmem>>, %arg3: memref<2x8x32xf32, #tpu.memory_space<vmem>>, %arg4: memref<1x32x8xf32, #tpu.memory_space<vmem>>, %arg5: memref<1x1x8xf32, #tpu.memory_space<vmem>>, %arg6: memref<1x8x32xf32, #tpu.memory_space<vmem>>, %arg7: memref<1x32xf32, #tpu.memory_space<vmem>>, %arg8: memref<2x8x32xf32, #tpu.memory_space<vmem>>, %arg9: memref<2x1x8x8xf32, #tpu.memory_space<vmem>>, %arg10: memref<2x8x32xf32, #tpu.memory_space<vmem>>) attributes {dimension_semantics = [#tpu.dimension_semantics<parallel>, #tpu.dimension_semantics<arbitrary>], iteration_bounds = array<i64: 2, 4>, scalar_prefetch = 0 : i64, scratch_operands = 1 : i64, tpu.core_type = #tpu.core_type<tc>, window_params = [{transform_indices = @transform_0, window_bounds = array<i64: 2, 8, 32>}, {pipeline_mode = #tpu.pipeline_mode<synchronous>, transform_indices = @transform_1, window_bounds = array<i64: 2, 8, 32>}, {transform_indices = @transform_2, window_bounds = array<i64: 1, 32, 8>}, {transform_indices = @transform_3, window_bounds = array<i64: 1, 1, 8>}, {transform_indices = @transform_4, window_bounds = array<i64: 1, 8, 32>}, {pipeline_mode = #tpu.pipeline_mode<synchronous>, transform_indices = @transform_5, window_bounds = array<i64: 1, 32>}, {transform_indices = @transform_6, window_bounds = array<i64: 2, 8, 32>}, {transform_indices = @transform_7, window_bounds = array<i64: 2, 1, 8, 8>}]} {
    %c0_i32 = arith.constant 0 : i32
    %0 = arith.cmpi eq, %arg1, %c0_i32 : i32
    %1 = arith.extui %0 : i1 to i32
    %c0_i32_0 = arith.constant 0 : i32
    %2 = arith.cmpi ne, %1, %c0_i32_0 : i32
    scf.if %2 {
      %cst_32 = arith.constant 0.000000e+00 : f32
      %44 = vector.broadcast %cst_32 : f32 to vector<2x8x32xf32>
      %c0_33 = arith.constant 0 : index
      %c0_34 = arith.constant 0 : index
      %c0_35 = arith.constant 0 : index
      %45 = vector.load %arg10[%c0_33, %c0_34, %c0_35] : memref<2x8x32xf32, #tpu.memory_space<vmem>>, vector<2x8x32xf32>
      tpu.vector_store %arg10[%c0_33, %c0_34, %c0_35], %44 {strides = array<i32>} : memref<2x8x32xf32, #tpu.memory_space<vmem>>, vector<2x8x32xf32>,
    } else {
    }
    %c0 = arith.constant 0 : index
    %c0_1 = arith.constant 0 : index
    %c0_2 = arith.constant 0 : index
    %3 = vector.load %arg4[%c0, %c0_1, %c0_2] : memref<1x32x8xf32, #tpu.memory_space<vmem>>, vector<1x32x8xf32>
    %4 = vector.shape_cast %3 : vector<1x32x8xf32> to vector<32x8xf32>
    %c0_3 = arith.constant 0 : index
    %c0_4 = arith.constant 0 : index
    %c0_5 = arith.constant 0 : index
    %5 = vector.load %arg5[%c0_3, %c0_4, %c0_5] : memref<1x1x8xf32, #tpu.memory_space<vmem>>, vector<1x1x8xf32>
    %6 = vector.shape_cast %5 : vector<1x1x8xf32> to vector<1x8xf32>
    %c0_6 = arith.constant 0 : index
    %c0_7 = arith.constant 0 : index
    %c0_8 = arith.constant 0 : index
    %7 = vector.load %arg2[%c0_6, %c0_7, %c0_8] : memref<2x8x32xf32, #tpu.memory_space<vmem>>, vector<2x8x32xf32>
    %8 = vector.shape_cast %7 : vector<2x8x32xf32> to vector<16x32xf32>
    %c0_9 = arith.constant 0 : index
    %c0_10 = arith.constant 0 : index
    %c0_11 = arith.constant 0 : index
    %9 = vector.load %arg3[%c0_9, %c0_10, %c0_11] : memref<2x8x32xf32, #tpu.memory_space<vmem>>, vector<2x8x32xf32>
    %10 = vector.shape_cast %9 : vector<2x8x32xf32> to vector<16x32xf32>
    %11 = tpu.concatenate %8, %10 in 0 : vector<16x32xf32>, vector<16x32xf32> -> vector<32x32xf32>
    %cst = arith.constant dense<0.000000e+00> : vector<32x8xf32>
    %12 = tpu.matmul %11, %4, %cst {dimension_numbers = #tpu.dot_dimension_numbers<[1], [0], [0], [1], [0, 0, 1, 1], [], []>} : vector<32x32xf32>, vector<32x8xf32>, vector<32x8xf32> -> vector<32x8xf32>
    %13 = vector.broadcast %6 : vector<1x8xf32> to vector<32x8xf32>
    %14 = arith.addf %12, %13 : vector<32x8xf32>
    %15 = vector.extract_strided_slice %14 {offsets = [0, 0], sizes = [16, 8], strides = [1, 1]} : vector<32x8xf32> to vector<16x8xf32>
    %16 = vector.shape_cast %15 : vector<16x8xf32> to vector<2x8x8xf32>
    %cst_12 = arith.constant 0.353553385 : f32
    %17 = vector.broadcast %cst_12 : f32 to vector<2x8x8xf32>
    %18 = arith.mulf %16, %17 : vector<2x8x8xf32>
    %19 = vector.extract_strided_slice %14 {offsets = [16, 0], sizes = [16, 8], strides = [1, 1]} : vector<32x8xf32> to vector<16x8xf32>
    %20 = vector.shape_cast %19 : vector<16x8xf32> to vector<2x8x8xf32>
    "tpu.trace_start"() <{level = 10 : i32, message = "bnd,bld->bnl"}> : () -> ()
    %cst_13 = arith.constant dense<0.000000e+00> : vector<2x8x8xf32>
    %21 = tpu.matmul %18, %20, %cst_13 {dimension_numbers = #tpu.dot_dimension_numbers<[2], [2], [1], [1], [0, 0, 0, 1, 1, 1], [0], [0]>} : vector<2x8x8xf32>, vector<2x8x8xf32>, vector<2x8x8xf32> -> vector<2x8x8xf32>
    "tpu.trace_stop"() : () -> ()
    %cst_14 = arith.constant dense<0xFF800000> : vector<8x8xf32>
    %22 = vector.multi_reduction <maximumf>, %21, %cst_14 [0] : vector<2x8x8xf32> to vector<8x8xf32>
    %23 = vector.shape_cast %22 : vector<8x8xf32> to vector<1x8x8xf32>
    %24 = vector.broadcast %23 : vector<1x8x8xf32> to vector<2x8x8xf32>
    %25 = arith.subf %21, %24 : vector<2x8x8xf32>
    %26 = math.exp %25 : vector<2x8x8xf32>
    %cst_15 = arith.constant dense<0.000000e+00> : vector<8x8xf32>
    %27 = vector.multi_reduction <add>, %26, %cst_15 [0] : vector<2x8x8xf32> to vector<8x8xf32>
    %28 = vector.shape_cast %27 : vector<8x8xf32> to vector<1x8x8xf32>
    %29 = tpu.reciprocal %28 : vector<1x8x8xf32> -> vector<1x8x8xf32>
    %30 = vector.broadcast %29 : vector<1x8x8xf32> to vector<2x8x8xf32>
    %31 = arith.mulf %26, %30 : vector<2x8x8xf32>
    %32 = vector.shape_cast %31 : vector<2x8x8xf32> to vector<2x1x8x8xf32>
    %c0_16 = arith.constant 0 : index
    %c0_17 = arith.constant 0 : index
    %c0_18 = arith.constant 0 : index
    %c0_19 = arith.constant 0 : index
    %33 = vector.load %arg9[%c0_16, %c0_17, %c0_18, %c0_19] : memref<2x1x8x8xf32, #tpu.memory_space<vmem>>, vector<2x1x8x8xf32>
    tpu.vector_store %arg9[%c0_16, %c0_17, %c0_18, %c0_19], %32 {strides = array<i32>} : memref<2x1x8x8xf32, #tpu.memory_space<vmem>>, vector<2x1x8x8xf32>,
    "tpu.trace_start"() <{level = 10 : i32, message = "bnl,bld->bnd"}> : () -> ()
    %cst_20 = arith.constant dense<0.000000e+00> : vector<2x8x8xf32>
    %34 = tpu.matmul %31, %20, %cst_20 {dimension_numbers = #tpu.dot_dimension_numbers<[2], [1], [1], [2], [0, 0, 0, 1, 1, 2], [0], [0]>} : vector<2x8x8xf32>, vector<2x8x8xf32>, vector<2x8x8xf32> -> vector<2x8x8xf32>
    "tpu.trace_stop"() : () -> ()
    %c0_21 = arith.constant 0 : index
    %c0_22 = arith.constant 0 : index
    %c0_23 = arith.constant 0 : index
    %35 = vector.load %arg10[%c0_21, %c0_22, %c0_23] : memref<2x8x32xf32, #tpu.memory_space<vmem>>, vector<2x8x32xf32>
    %c0_24 = arith.constant 0 : index
    %c0_25 = arith.constant 0 : index
    %c0_26 = arith.constant 0 : index
    %36 = vector.load %arg6[%c0_24, %c0_25, %c0_26] : memref<1x8x32xf32, #tpu.memory_space<vmem>>, vector<1x8x32xf32>
    %37 = vector.shape_cast %36 : vector<1x8x32xf32> to vector<8x32xf32>
    "tpu.trace_start"() <{level = 10 : i32, message = "bnd,dc->bnc"}> : () -> ()
    %cst_27 = arith.constant dense<0.000000e+00> : vector<2x8x32xf32>
    %38 = tpu.matmul %34, %37, %cst_27 {dimension_numbers = #tpu.dot_dimension_numbers<[2], [0], [0, 1], [1], [0, 0, 0, 1, 1, 1], [], []>} : vector<2x8x8xf32>, vector<8x32xf32>, vector<2x8x32xf32> -> vector<2x8x32xf32>
    "tpu.trace_stop"() : () -> ()
    %39 = arith.addf %35, %38 : vector<2x8x32xf32>
    %c0_28 = arith.constant 0 : index
    %c0_29 = arith.constant 0 : index
    %c0_30 = arith.constant 0 : index
    %40 = vector.load %arg10[%c0_28, %c0_29, %c0_30] : memref<2x8x32xf32, #tpu.memory_space<vmem>>, vector<2x8x32xf32>
    tpu.vector_store %arg10[%c0_28, %c0_29, %c0_30], %39 {strides = array<i32>} : memref<2x8x32xf32, #tpu.memory_space<vmem>>, vector<2x8x32xf32>,
    %c3_i32 = arith.constant 3 : i32
    %41 = arith.cmpi eq, %arg1, %c3_i32 : i32
    %42 = arith.extui %41 : i1 to i32
    %c0_i32_31 = arith.constant 0 : i32
    %43 = arith.cmpi ne, %42, %c0_i32_31 : i32
    scf.if %43 {
      %c0_32 = arith.constant 0 : index
      %c0_33 = arith.constant 0 : index
      %c0_34 = arith.constant 0 : index
      %44 = vector.load %arg10[%c0_32, %c0_33, %c0_34] : memref<2x8x32xf32, #tpu.memory_space<vmem>>, vector<2x8x32xf32>
      %c0_35 = arith.constant 0 : index
      %c0_36 = arith.constant 0 : index
      %45 = vector.load %arg7[%c0_35, %c0_36] : memref<1x32xf32, #tpu.memory_space<vmem>>, vector<1x32xf32>
      %46 = vector.shape_cast %45 : vector<1x32xf32> to vector<1x1x32xf32>
      %47 = vector.broadcast %46 : vector<1x1x32xf32> to vector<2x8x32xf32>
      %48 = arith.addf %44, %47 : vector<2x8x32xf32>
      %c0_37 = arith.constant 0 : index
      %c0_38 = arith.constant 0 : index
      %c0_39 = arith.constant 0 : index
      %49 = vector.load %arg8[%c0_37, %c0_38, %c0_39] : memref<2x8x32xf32, #tpu.memory_space<vmem>>, vector<2x8x32xf32>
      tpu.vector_store %arg8[%c0_37, %c0_38, %c0_39], %48 {strides = array<i32>} : memref<2x8x32xf32, #tpu.memory_space<vmem>>, vector<2x8x32xf32>,
    } else {
    }
    return
  }
  func.func @transform_0(%arg0: i32, %arg1: i32) -> (i32, i32, i32) {
    %c0_i32 = arith.constant 0 : i32
    %c0_i32_0 = arith.constant 0 : i32
    %c0_i32_1 = arith.constant 0 : i32
    return %c0_i32, %arg0, %c0_i32_0 : i32, i32, i32
  }
  func.func @transform_1(%arg0: i32, %arg1: i32) -> (i32, i32, i32) {
    %c0_i32 = arith.constant 0 : i32
    %c0_i32_0 = arith.constant 0 : i32
    %c0_i32_1 = arith.constant 0 : i32
    %c0_i32_2 = arith.constant 0 : i32
    return %c0_i32, %c0_i32_0, %c0_i32_1 : i32, i32, i32
  }
  func.func @transform_2(%arg0: i32, %arg1: i32) -> (i32, i32, i32) {
    %c0_i32 = arith.constant 0 : i32
    %c0_i32_0 = arith.constant 0 : i32
    %c0_i32_1 = arith.constant 0 : i32
    return %arg1, %c0_i32, %c0_i32_0 : i32, i32, i32
  }
  func.func @transform_3(%arg0: i32, %arg1: i32) -> (i32, i32, i32) {
    %c0_i32 = arith.constant 0 : i32
    %c0_i32_0 = arith.constant 0 : i32
    %c0_i32_1 = arith.constant 0 : i32
    return %arg1, %c0_i32, %c0_i32_0 : i32, i32, i32
  }
  func.func @transform_4(%arg0: i32, %arg1: i32) -> (i32, i32, i32) {
    %c0_i32 = arith.constant 0 : i32
    %c0_i32_0 = arith.constant 0 : i32
    %c0_i32_1 = arith.constant 0 : i32
    return %arg1, %c0_i32, %c0_i32_0 : i32, i32, i32
  }
  func.func @transform_5(%arg0: i32, %arg1: i32) -> (i32, i32) {
    %c0_i32 = arith.constant 0 : i32
    %c0_i32_0 = arith.constant 0 : i32
    %c0_i32_1 = arith.constant 0 : i32
    return %c0_i32, %c0_i32_0 : i32, i32
  }
  func.func @transform_6(%arg0: i32, %arg1: i32) -> (i32, i32, i32) {
    %c0_i32 = arith.constant 0 : i32
    %c0_i32_0 = arith.constant 0 : i32
    %c0_i32_1 = arith.constant 0 : i32
    return %c0_i32, %arg0, %c0_i32_0 : i32, i32, i32
  }
  func.func @transform_7(%arg0: i32, %arg1: i32) -> (i32, i32, i32, i32) {
    %c0_i32 = arith.constant 0 : i32
    %c0_i32_0 = arith.constant 0 : i32
    %c0_i32_1 = arith.constant 0 : i32
    return %c0_i32, %arg1, %arg0, %c0_i32_0 : i32, i32, i32, i32
  }
}

</mosaic_0001>

<bundles_post_ra>
// kernel: tpu_custom_call.1
= control target key start
LH: loop header
LB: loop body
LE: loop exit
PB: predicated region body
PF: predicated region fallthrough
CT: control target
= control target key end

     0   :  { %s1760_s0 = inlined_call_operand.vmem [shape: f32[2,16,32], index: 0, kind: input, shape index: {}]   ;;  %s1761_s1 = inlined_call_operand.vmem [shape: f32[2,8,32], index: 1, kind: input, shape index: {}]   ;;  %s1762_s2 = inlined_call_operand.vmem [shape: f32[4,32,8], index: 2, kind: input, shape index: {}]   ;;  %s1763_s3 = inlined_call_operand.vmem [shape: f32[4,1,8], index: 3, kind: input, shape index: {}]   ;;  %s1764_s4 = inlined_call_operand.vmem [shape: f32[4,8,32], index: 4, kind: input, shape index: {}]   ;;  %s1765_s5 = inlined_call_operand.vmem [shape: f32[1,32], index: 5, kind: input, shape index: {}]   ;;  %s1766_s6 = inlined_call_operand.hbm [shape: f32[2,16,32], index: 6, kind: output, shape index: {0}]   ;;  %s1767_s7 = inlined_call_operand.vmem [shape: f32[2,4,16,8], index: 7, kind: output, shape index: {1}]  }
   0x1   :  { %1776 = sst [smem:[#allocation17_spill]] %s1760_s0 }
   0x2   :  { %13 = vsyncpa [#allocation5], 0 }
   0x3   :  { %15 = vsyncpa [#allocation5 + $0x1], 0  ;;  %s1493_s24 = smov 0   ;;  %s1495_s25 = smov 0  }
   0x4   :  { %s1497_s26 = smov 0   ;;  %s1499_s27 = smov 0  }
   0x5   :  { %s1501_s28 = smov 0   ;;  %s1503_s29 = smov 0  }
   0x6   :  { %s1505_s30 = smov 0   ;;  %s1507_s8 = smov 0  }
   0x7   :  { %s1509_s9 = smov 0   ;;  %s1511_s10 = smov 0  }
   0x8 LB: > { %1777 = sst [smem:[#allocation8_spill]] %s1412_s25  ;;  %s1132_s11 = sadd.s32 4294967295, %s1444_s10   ;;  %s1444_s10 = sphi %s1511_s10, %s21_s10   ;;  %s1440_s9 = sphi %s1509_s9, %s1801_s9   ;;  %s1436_s8 = sphi %s1507_s8, %s1800_s8   ;;  %s1432_s30 = sphi %s1505_s30, %s1804_s30   ;;  %s1428_s29 = sphi %s1503_s29, %s1798_s29   ;;  %s1424_s28 = sphi %s1501_s28, %s1797_s28   ;;  %s1420_s27 = sphi %s1499_s27, %s1803_s27   ;;  %s1416_s26 = sphi %s1497_s26, %s1802_s26   ;;  %s1412_s25 = sphi %s1495_s25, %s1795_s25   ;;  %s1408_s24 = sphi %s1493_s24, %s1794_s24  }
   0x9   : > { %1778 = sst [smem:[#allocation9_spill]] %s1416_s26  ;;  %s1133_s12 = sadd.s32 4294967294, %s1444_s10  }
   0xa   : > { %1779 = sst [smem:[#allocation10_spill]] %s1424_s28  ;;  %s30_s13 = sadd.s32 1, %s1436_s8 }
   0xb   : > { %1780 = sst [smem:[#allocation11_spill]] %s1436_s8  ;;  %s33_s14 = sadd.s32 1, %s1440_s9 }
   0xc   : > { %1781 = sst [smem:[#allocation12_spill]] %s1440_s9  ;;  %p31_p0 = scmp.ge.s32.totalorder %s30_s13, 4 }
   0xd   : > { %s40_s15 = sadd.s32 1, %s1424_s28  ;;  %p47_p1 = scmp.ne.s32.totalorder %s1424_s28, %s1420_s27 }
   0xe   : > { %p48_p2 = scmp.eq.s32.totalorder %s1444_s10, 0  ;;  %s1806_s13 = smov (%p31_p0, %s30_s13), 0 }
   0xf   : > { %1782 = sst [smem:[#allocation13_spill]] %s1806_s13  ;;  %s1808_s14 = smov (!%p31_p0, %s33_s14), %s1440_s9 }
  0x10   : > { %p1554_p3 = por %p48_p2, %p47_p1  ;;  %p1558_p4 = scmp.eq.s32.totalorder %s1132_s11, 7 }
  0x11   : > { %p35_p5 = scmp.ge.s32.totalorder %s1808_s14, 2  ;;  %p202_p6 = scmp.ne.s32.totalorder %s1420_s27, %s1416_s26 }
  0x12   : > { %p1566_p7 = por %p1558_p4, %p47_p1  ;;  %p203_p8 = scmp.eq.s32.totalorder %s1133_s12, 7 }
  0x13   : > { %s1810_s14 = smov (%p35_p5, %s1808_s14), 0  ;;  %s209_s20 = ssub.s32 %s1436_s8, %s1806_s13 }
  0x14   : > { %1786 = sst [smem:[#allocation14_spill]] %s1810_s14  ;;  %p1572_p9 = por %p203_p8, %p202_p6 }
  0x15   : > { %s37_s21 = ssub.s32 %s1440_s9, %s1810_s14  ;;  %s214_s22 = sadd.s32 1, %s1412_s25 }
  0x16   : > { %p38_p10 = scmp.eq.s32.totalorder %s37_s21, 0  ;;  %s211_s23 = sor.u32 %s209_s20, %s37_s21 }
  0x17   : > { %p212_p11 = scmp.eq.s32.totalorder %s211_s23, 0  ;;  %p224_p12 = scmp.ne.s32.totalorder %s1412_s25, %s1408_s24 }
  0x18   : > { %s1584_s11 = scalar_select %p38_p10, %s1424_s28, %s40_s15  }
  0x19   : > { %s1587_s26 = scalar_select %p212_p11, %s1412_s25, %s214_s22  }
  0x1a   : > { %1788 = sst [smem:[#allocation15_spill]] %s1584_s11  ;;  %p1591_p13 = por %p224_p12, %p1558_p4 }
  0x1b   : > { %1789 = sst [smem:[#allocation16_spill]] %s1587_s26  ;;  %p1135_p0 = scmp.ge.s32.totalorder %s1444_s10, 8 }
  0x1d   : > { %253 = sbr.rel (%p1135_p0) target bundleno = 47 (0x2f), region = 24 }
  0x24   : > { %256 = sbr.rel (!%p1554_p3) target bundleno = 47 (0x2f), region = 28  ;;  %s258_s20 = sand.u32 (%p1554_p3), 1, %s1424_s28  }
  0x25   : > { %s1137_s21 = sshll.u32 (%p1554_p3), %s1440_s9, 3  ;;  %s1136_s23 = sshll.u32 (%p1554_p3), %s258_s20, 4 }
  0x26   : > { %s1791_s0 = sld [smem:[#allocation17_spill]] (%p1554_p3)  ;;  %s260_s17 = scalar_lea.vmem (%p1554_p3), [#allocation3], %s1136_s23 }
  0x2c   : > { %s262_s22 = scalar_lea.vmem %s1791_s0, %s1137_s21 }
  0x2d   : > { %v292_v0 = vld [vmem:[%s262_s22] sm:$0xff]  ;;  %v294_v1 = vld [vmem:[%s262_s22 + $0x10] sm:$0xff] }
  0x2e   : > { %293 = vst [vmem:[%s260_s17] sm:$0xff] %v292_v0  ;;  %295 = vst [vmem:[%s260_s17 + $0x8] sm:$0xff] %v294_v1 }
  0x2f PF: > { %p1138_p1 = scmp.ge.s32.totalorder %s1444_s10, 1  ;;  %p321_p2 = scmp.lt.s32.totalorder %s1444_s10, 9 }
  0x31   : > { %p322_p3 = pnand %p1138_p1, %p321_p2 }
  0x32   : > { %s1772_s14 = sand.u32 (!%p322_p3), 1, %s1420_s27   ;;  %s372_s16 = sand.u32 (!%p322_p3), 1, %s1408_s24  }
  0x33   : > { %325 = sbr.rel (%p322_p3) target bundleno = 1021 (0x3fd), region = 78  ;;  %s1609_s20 = sshll.u32 (!%p322_p3), %s1772_s14, 4 }
  0x34   : > { %s1141_s21 = sshll.u32 (!%p322_p3), %s372_s16, 4  ;;  %p375_p4 = scmp.lt.s32.totalorder (!%p322_p3), %s1428_s29, 3 }
  0x35   : > { %s330_s28 = scalar_lea.vmem (!%p322_p3), [#allocation3], %s1609_s20  ;;  %s1631_s26 = scalar_lea.vmem (!%p322_p3), [#allocation4], %s1609_s20 }
  0x36   : > { %s1633_s25 = scalar_lea.vmem (!%p322_p3), [#allocation6], %s1141_s21  ;;  %p1145_p5 = scmp.ne.s32.totalorder (!%p322_p3), %s1428_s29, 0 }
  0x3a   : > { %s1613_s23 = scalar_select %p375_p4, %s1428_s29, 3 }
  0x3b   : > { %390 = sbr.rel (%p1145_p5) target bundleno = 66 (0x42), region = 86  ;;  %vm391_vm0 = vcmask (!%p1145_p5), 261120   ;;  %v1446_v2 = vmov (!%p1145_p5), 0.0  }
  0x3c   : > { %s1168_s15 = sshll.u32 %s1613_s23, 5  ;;  %s382_s0 = scalar_lea.vmem %s1763_s3, %s1613_s23  ;;  %392 = vst.msk [vmem:[#allocation2] sm:$0xff] (!%p1145_p5), %vm391_vm0, %v1446_v2  ;;  %393 = vst.msk [vmem:[#allocation2 + $0x8] sm:$0xff] (!%p1145_p5), %vm391_vm0, %v1446_v2 }
  0x3d   : > { %s379_s24 = scalar_lea.vmem %s1762_s2, %s1168_s15  ;;  %s1144_s14 = sshll.u32 %s1613_s23, 3 }
  0x3e   : > { %s1627_s16 = scalar_lea.vmem %s1764_s4, %s1144_s14 }
  0x42 PF: > { %v394_v3 = vld [vmem:[%s379_s24] sm:$0xff]  ;;  %v395_v4 = vld [vmem:[%s379_s24 + $0x8] sm:$0xff]  ;;  %v396_v5 = vld [vmem:[%s379_s24 + $0x10] sm:$0xff]  ;;  %vm409_vm1 = vcmask 261120   ;;  %v1447_v13 = vmov 0.0   ;;  %vm1448_vm2 = vmmov 0  }
  0x43   : > { %v1227_v6 = vpack.c.bf16 %v395_v4, %v394_v3  ;;  %v397_v7 = vld [vmem:[%s379_s24 + $0x18] sm:$0xff]  ;;  %v399_v8 = vld [vmem:[%s330_s28] sm:$0xff]  ;;  %v402_v12 = vld [vmem:[%s1761_s1 + $0x8] sm:$0xff]  ;;  %1202 = vmatprep.subr.mxu1 %v1447_v13  ;;  %1204 = vmatprep.mubr.msk.f32.mxu1 %vm1448_vm2, %v1447_v13  ;;  %vm509_vm3 = vcmask 64512   ;;  %p1159_p6 = scmp.ne.s32.totalorder %s1428_s29, 3 }
  0x44   : > { %v1231_v9 = vpack.c.bf16 %v397_v7, %v396_v5  ;;  %1196 = vmatprep.mubr.msk.f32.mxu0 %vm409_vm1, %v399_v8  ;;  %v400_v10 = vld [vmem:[%s330_s28 + $0x8] sm:$0xff]  ;;  %v401_v11 = vld [vmem:[%s1761_s1] sm:$0xff] }
  0x45   : > { %1228 = vmatprep.subr.bf16.mxu0 %v1227_v6  ;;  %v1146_v16 = vld [vmem:[%s382_s0] ss:$0 sm:$0xff]  ;;  %v826_v49 = vld [vmem:[#allocation2 + $0x8] sm:$0xff] }
  0x46   : > { %1230 = vmatpush3.bf16.msra.mxu0 %v1227_v6  ;;  %v827_v25 = vld [vmem:[%s1627_s16] sm:$0xff] }
  0x47   : > { %1232 = vmatprep.subr.bf16.mxu0 %v1231_v9  ;;  %v825_v50 = vld [vmem:[#allocation2] sm:$0xff] }
  0x48   : > { %v1160_v56 = vld [vmem:[%s1765_s5] ss:$0 sm:$0xff] (!%p1159_p6) }
  0x4a   : > { %1234 = vmatpush3.bf16.msra.mxu0 %v1231_v9 }
  0x4b   : > { %1217 = vmatprep.subr.mxu0 %v1447_v13 }
  0x4d   : > { %1197 = vmatmul.mubr.msk.f32.vlgmr.msra.gmra.mrb[0].mxu0 %vm409_vm1, %v400_v10 }
  0x4e   : > { %1199 = vmatprep.mubr.msk.f32.mxu0 %vm409_vm1, %v401_v11 }
  0x51   : > { %1200 = vmatmul.mubr.msk.f32.gmra.mrb[2].mxu0 %vm409_vm1, %v402_v12 }
  0x52   : > { %1219 = vmatprep.mubr.msk.f32.mxu0 %vm1448_vm2, %v1447_v13 }
 0x120   : > { %v1198_v14 = vpop.f32.mrb[0].mxu0 }
 0x121   : > { %v488_v15 = vpop.f32.mrb[1].mxu0  ;;  %v494_v22 = vadd.f32 %v1198_v14, %v1146_v16 }
 0x122   : > { %v489_v18 = vadd.f32 %v1146_v16, %v488_v15 }
 0x123   : > { %v508_v24 = vmul.f32 0.35355338, %v494_v22 }
 0x124   : > { %v1201_v17 = vpop.f32.mrb[2].mxu0  ;;  %v507_v23 = vmul.f32 0.35355338, %v489_v18 }
 0x125   : > { %v504_v19 = vadd.f32 %v1201_v17, %v1146_v16  ;;  %v498_v20 = vpop.f32.mrb[3].mxu0 }
 0x126   : > { %v499_v21 = vadd.f32 %v1146_v16, %v498_v20 }
 0x127   : > { %1218 = vmatpush3.msra.mxu0 %v504_v19 }
 0x128   : > { %1203 = vmatpush3.xpose.msk.msra.mxu1 %vm509_vm3, %v499_v21 }
 0x129   : > { %1207 = vmatprep.subr.mxu1 %v1447_v13 }
 0x12b   : > { %1205 = vmatmul.mubr.msk.f32.vlgmr.msra.gmra.mrb[0].mxu1 %vm509_vm3, %v507_v23 }
 0x12c   : > { %1208 = vmatpush3.xpose.msk.msra.mxu1 %vm509_vm3, %v504_v19  ;;  %1209 = vmatprep.mubr.msk.f32.mxu1 %vm1448_vm2, %v1447_v13 }
 0x12d   : > { %1212 = vmatprep.subr.mxu1 %v1447_v13 }
 0x12f   : > { %1210 = vmatmul.mubr.msk.f32.vlgmr.msra.gmra.mrb[2].mxu1 %vm509_vm3, %v508_v24 }
 0x130   : > { %1213 = vmatpush3.msra.mxu1 %v499_v21  ;;  %1214 = vmatprep.mubr.msk.f32.mxu1 %vm1448_vm2, %v1447_v13 }
 0x131   : > { %1222 = vmatprep.subr.mxu1 %v827_v25 }
 0x1fe   : > { %v582_v26 = vpop.f32.mrb[0].mxu1 }
 0x1ff   : > { %v1206_v27 = vpop.f32.mrb[1].mxu1  ;;  %v662_v29 = vsel %vm509_vm3, %v582_v26, -inf }
 0x202   : > { %v658_v28 = vpop.f32.mrb[2].mxu1 }
 0x203   : > { %v663_v30 = vsel %vm509_vm3, %v658_v28, -inf  ;;  %v1211_v31 = vpop.f32.mrb[3].mxu1 }
 0x204   : > { %v664_v32 = vmax.f32 %v662_v29, %v663_v30 }
 0x206   : > { %v665_v33 = vsub.f32 %v582_v26, %v664_v32  ;;  %v666_v34 = vsub.f32 %v658_v28, %v664_v32 }
 0x208   : > { %v667_v35 = vmul.f32 1.442695, %v665_v33  ;;  %v669_v36 = vmul.f32 1.442695, %v666_v34 }
 0x20a   : > { %1328 = vpow2.f32 %v667_v35 }
 0x20b   : > { %1330 = vpow2.f32 %v669_v36 }
 0x214   : > { %v1329_v37 = vpop.eup %1328 }
 0x215   : > { %v1331_v38 = vpop.eup %1330  ;;  %v671_v39 = vsel %vm509_vm3, %v1329_v37, 0.0 }
 0x216   : > { %v672_v40 = vsel %vm509_vm3, %v1331_v38, 0.0 }
 0x217   : > { %v673_v41 = vadd.f32 %v672_v40, %v671_v39 }
 0x219   : > { %1332 = vrcp.f32 %v673_v41 }
 0x223   : > { %v1333_v42 = vpop.eup %1332 }
 0x224   : > { %v676_v43 = vmul.f32 %v1333_v42, %v1331_v38  ;;  %v675_v44 = vmul.f32 %v1333_v42, %v1329_v37 }
 0x226   : > { %678 = vst.msk [vmem:[%s1633_s25 + $0x8] sm:$0xff] %vm509_vm3, %v676_v43  ;;  %677 = vst.msk [vmem:[%s1633_s25] sm:$0xff] %vm509_vm3, %v675_v44  ;;  %1215 = vmatmul.mubr.msk.f32.vlgmr.msra.gmra.mrb[4].mxu1 %vm509_vm3, %v675_v44  ;;  %1220 = vmatmul.mubr.msk.f32.vlgmr.msra.gmra.mrb[4].mxu0 %vm509_vm3, %v676_v43 }
 0x227   : > { %1223 = vmatpush3.msra.mxu1 %v827_v25 }
 0x2f9   : > { %v748_v45 = vpop.f32.mrb[4].mxu1  ;;  %v821_v46 = vpop.f32.mrb[4].mxu0 }
 0x2fa   : > { %v1216_v47 = vpop.f32.mrb[5].mxu1  ;;  %v1221_v48 = vpop.f32.mrb[5].mxu0  ;;  %1224 = vmatprep.mubr.msk.f32.mxu1 %vm509_vm3, %v748_v45 }
 0x2fb   : > { %1225 = vmatmul.mubr.msk.f32.vlgmr.msra.gmra.mrb[6].mxu1 %vm509_vm3, %v821_v46 }
 0x3cc   : > { %916 = sbr.rel (%p1159_p6) target bundleno = 989 (0x3dd), region = 90 }
 0x3ce   : > { %v1226_v51 = vpop.f32.mrb[6].mxu1 }
 0x3cf   : > { %v910_v52 = vadd.f32 %v1226_v51, %v826_v49  ;;  %v900_v53 = vpop.f32.mrb[7].mxu1 }
 0x3d0   : > { %v909_v54 = vadd.f32 %v900_v53, %v825_v50 }
 0x3d1   : > { %912 = vst.msk [vmem:[#allocation2 + $0x8] sm:$0xff] %vm409_vm1, %v910_v52 }
 0x3d2   : > { %911 = vst.msk [vmem:[#allocation2] sm:$0xff] %vm409_vm1, %v909_v54 }
 0x3d8   : > { %v918_v57 = vld [vmem:[#allocation2 + $0x8] sm:$0xff] }
 0x3d9   : > { %v917_v55 = vld [vmem:[#allocation2] sm:$0xff]  ;;  %v927_v59 = vadd.f32 %v1160_v56, %v918_v57 }
 0x3da   : > { %v926_v58 = vadd.f32 %v1160_v56, %v917_v55 }
 0x3db   : > { %929 = vst.msk [vmem:[%s1631_s26 + $0x8] sm:$0xff] %vm409_vm1, %v927_v59 }
 0x3dc   : > { %928 = vst.msk [vmem:[%s1631_s26] sm:$0xff] %vm409_vm1, %v926_v58 }
 0x3dd PF: > { %s1163_s21 = sshll.u32 %s1432_s30, 7  ;;  %s947_s17 = sshll.u32 %s1631_s26, 4  ;;  %s1689_s17 = int_to_ptr.vmem [resolvable:$true] %s947_s17 }
 0x3de   : > { %s1686_s22 = scalar_lea.hbm %s1766_s6, %s1163_s21  ;;  %s1792_s24 = sand.u32 1, %s1420_s27  }
 0x3df   : > { %s1693_s16 = scalar_lea.sflag [#allocation5], %s1792_s24  ;;  %s1334_s8 = scalar_lea.vmem %s1689_s17, 256 }
 0x3e0   : > { %p1335_p8 = scmp.ne.s32.totalorder %s1689_s17, %s1334_s8  ;;  %s1449_s9 = smov [#allocation4]  }
 0x3e1   : > { %s1338_s13 = sshll.u32 %s1449_s9, 4  ;;  %s1339_s13 = int_to_ptr.vmem [resolvable:$false] %s1338_s13 }
 0x3e2   : > { %p1336_p10 = pnand %p1335_p8, %p1566_p7  ;;  %s1340_s11 = scalar_lea.vmem %s1339_s13, 512 }
 0x3e3   : > { %p1341_p12 = scmp.lt.s32.totalorder %s1689_s17, %s1339_s13  ;;  %p1342_p0 = scmp.lt.s32.totalorder %s1340_s11, %s1334_s8 }
 0x3e4   : > { %p1337_p11 = pneg %p1336_p10 }
 0x3e5   : > { %p1343_p1 = por %p1342_p0, %p1341_p12 }
 0x3e7   : > { %p1344_p2 = pnand %p1343_p1, %p1337_p11 }
 0x3e9   : > { %1347 = shalt.err (!%p1344_p2)
}
 0x3ea   : > { %s1348_s26 = scalar_lea.hbm %s1686_s22, 256  ;;  %s1352_s0 = scalar_lea.hbm %s1766_s6, 512 }
 0x3eb   : > { %p1349_p3 = scmp.ne.s32.totalorder %s1686_s22, %s1348_s26  ;;  %p1353_p6 = scmp.lt.u32.totalorder %s1686_s22, %s1766_s6 }
 0x3ec   : > { %p1354_p8 = scmp.lt.u32.totalorder %s1352_s0, %s1348_s26  ;;  %p1356_p11 = scmp.lt.u32.totalorder %s1348_s26, %s1686_s22 }
 0x3ed   : > { %p1350_p4 = pnand %p1349_p3, %p1566_p7 }
 0x3ee   : > { %p1355_p10 = por %p1354_p8, %p1353_p6 }
 0x3ef   : > { %p1351_p5 = pneg %p1350_p4 }
 0x3f0   : > { %p1357_p12 = por %p1356_p11, %p1355_p10 }
 0x3f2   : > { %p1358_p0 = pnand %p1357_p12, %p1351_p5 }
 0x3f4   : > { %1361 = shalt.err (!%p1358_p0)
}
 0x3f5   : > { %s1450_s23 = smov 128   ;;  %s1451_s15 = smov 256   ;;  %v990_v60 = vld [vmem:[%s1633_s25] sm:$0xff] (%p1591_p13)  ;;  %v992_v61 = vld [vmem:[%s1633_s25 + $0x8] sm:$0xff] (%p1591_p13) }
 0x3f6   : > { %s1452_s24 = smov 8   ;;  %956 = sbr.rel (!%p1591_p13) target bundleno = 1021 (0x3fd), region = 98 }
 0x3f7   : > { %1235 = dma.vmem_to_hbm [thread:$0]  (%p1566_p7), %s1689_s17, 256, %s1686_s22, %s1693_s16, %s1450_s23, %s1451_s15, %s1452_s24  }
 0x3f8   : > { %s1164_s8 = sshll.u32 (%p1591_p13), %s1428_s29, 1 }
 0x3f9   : > { %s958_s9 = sadd.s32 (%p1591_p13), %s1432_s30, %s1164_s8 }
 0x3fa   : > { %s1165_s13 = sshll.u32 (%p1591_p13), %s958_s9, 3 }
 0x3fb   : > { %s960_s28 = scalar_lea.vmem (%p1591_p13), %s1767_s7, %s1165_s13 }
 0x3fc   : > { %991 = vst [vmem:[%s960_s28] sm:$0xff] (%p1591_p13), %v990_v60  ;;  %993 = vst [vmem:[%s960_s28 + $0x40] sm:$0xff] (%p1591_p13), %v992_v61 }
 0x3fd PF: > { %s1793_s18 = sld [smem:[#allocation9_spill]]  ;;  %p1241_p7 = scmp.ge.s32.totalorder %s1444_s10, 2 }
 0x3ff   : > { %p1238_p13 = pnand %p1241_p7, %p1572_p9 }
 0x403   : > { %s1005_s12 = sand.u32 1, %s1793_s18  }
 0x404   : > { %s1006_s29 = scalar_lea.sflag [#allocation5], %s1005_s12 }
 0x405   : > { %1403 = dma.done.wait (!%p1238_p13), %s1006_s29, 256  }
 0x406   : > { %1405 = vsyncadd (!%p1238_p13), %s1006_s29, 4294967040  ;;  %s21_s10 = sadd.s32 1, %s1444_s10   ;;  %s1794_s24 = sld [smem:[#allocation8_spill]] }
 0x407   : > { %p18_p1 = scmp.ge.s32.totalorder %s21_s10, 10   ;;  %s1795_s25 = sld [smem:[#allocation16_spill]] }
 0x408   : > { %s1796_s30 = sld [smem:[#allocation10_spill]]  ;;  %s1797_s28 = sld [smem:[#allocation15_spill]] }
 0x409   : > { %s1798_s29 = sld [smem:[#allocation11_spill]]  ;;  %s1799_s22 = sld [smem:[#allocation12_spill]] }
 0x40a   : > { %s1800_s8 = sld [smem:[#allocation13_spill]]  ;;  %s1801_s9 = sld [smem:[#allocation14_spill]] }
 0x40b   : > { %s1802_s26 = smov %s1420_s27  ;;  %20 = sbr.rel (!%p18_p1) target bundleno = 8 (0x8), region = 189 }
 0x40e   : > { %s1803_s27 = smov %s1796_s30 }
 0x40f   : > { %s1804_s30 = smov %s1799_s22 }
 0x412   :  { %1018 = vsyncpa [#allocation5], 1 }
 0x413   :  { %1020 = vsyncpa [#allocation5 + $0x1], 1 }

</bundles_post_ra>
